<compile_context>
chip_gen: v6e
topology: v6e:2x2x1
jax: 0.10.0
libtpu: 0.0.40
codegen_flags: <defaults>
</compile_context>

<pallas_src>
import functools

import jax
import jax.numpy as jnp
from jax.experimental import pallas as pl
from jax.experimental.pallas import tpu as pltpu

_HIDDEN = 64
_N_OUT = 3
_N_OUT_PADDED = 128  # lane-dense head width


def _round_up(x, m):
    return ((x + m - 1) // m) * m


def _mountaincar_kernel(x_ref, w1_ref, b1_ref, w2_ref, b2_ref, w3_ref, b3_ref, o_ref):
    x = x_ref[...]                                   # (TB, 2) f32

    # Layer 1 on the VPU: K=2 contraction as two broadcast FMAs (no MXU round-trip).
    #   h1 = x[:,0]*w1[0,:] + x[:,1]*w1[1,:] + b1
    h1 = (x[:, 0:1] * w1_ref[0:1, :]
          + x[:, 1:2] * w1_ref[1:2, :]
          + b1_ref[...])
    h1 = jnp.maximum(h1, 0.0)                        # (TB, 64) f32

    # Layer 2 on the MXU: (TB,64) @ (64,64); weights may be bf16, accumulate in f32.
    h2 = jnp.dot(h1.astype(w2_ref.dtype), w2_ref[...],
                 preferred_element_type=jnp.float32)
    h2 = jnp.maximum(h2 + b2_ref[...], 0.0)          # (TB, 64) f32

    # Head on the MXU, lane-dense: (TB,64) @ (64,128) + (1,128). Unmasked store.
    out = jnp.dot(h2.astype(w3_ref.dtype), w3_ref[...],
                  preferred_element_type=jnp.float32) + b3_ref[...]
    o_ref[...] = out.astype(o_ref.dtype)             # (TB, 128) f32


@functools.partial(jax.jit, static_argnames=("block_b", "use_bf16"))
def mountaincar_forward(x, params, *, block_b=512, use_bf16=False):
    """x: (B, 2) float32; params: dict of weights/biases. Returns (B, 3) float32."""
    B = x.shape[0]
    compute_dtype = jnp.bfloat16 if use_bf16 else jnp.float32

    # Batch tile: multiple of 8 sublanes, capped at block_b (512 keeps v5e's
    # 16 MiB scoped-VMEM / single-vst-slot path comfortable).
    tb = min(_round_up(B, 8), _round_up(block_b, 8))
    b_padded = _round_up(B, tb)
    if b_padded != B:
        x = jnp.pad(x, ((0, b_padded - B), (0, 0)))

    w1 = params["w1"].astype(jnp.float32)            # (2, 64)  stays f32 (VPU layer)
    b1 = params["b1"].astype(jnp.float32)            # (1, 64)
    w2 = params["w2"].astype(compute_dtype)          # (64, 64)
    b2 = params["b2"].astype(jnp.float32)            # (1, 64)
    # Lane-dense head: zero-pad output columns 3..127.
    w3 = jnp.pad(params["w3"], ((0, 0), (0, _N_OUT_PADDED - _N_OUT))).astype(compute_dtype)
    b3 = jnp.pad(params["b3"], ((0, 0), (0, _N_OUT_PADDED - _N_OUT))).astype(jnp.float32)

    n_blocks = b_padded // tb

    def const_spec(shape):
        # Weights/biases: one full block, VMEM-resident across all batch tiles.
        return pl.BlockSpec(shape, lambda i: tuple(0 for _ in shape))

    out = pl.pallas_call(
        _mountaincar_kernel,
        out_shape=jax.ShapeDtypeStruct((b_padded, _N_OUT_PADDED), jnp.float32),
        grid=(n_blocks,),
        in_specs=[
            pl.BlockSpec((tb, 2), lambda i: (i, 0)),          # x: tiled over batch
            const_spec(w1.shape), const_spec(b1.shape),
            const_spec(w2.shape), const_spec(b2.shape),
            const_spec(w3.shape), const_spec(b3.shape),
        ],
        out_specs=pl.BlockSpec((tb, _N_OUT_PADDED), lambda i: (i, 0)),
        compiler_params=pltpu.CompilerParams(
            dimension_semantics=("parallel",),                # shards batch across TCs on v7x
        ),
    )(x, w1, b1, w2, b2, w3, b3)

    return out[:B, :_N_OUT]


def init_params(key):
    """Deterministic synthetic parameters matching the PyTorch module's shapes.
    Stored as (in, out); biases kept 2-D (1, out) for TPU-friendly layout."""
    k1, k2, k3, k4, k5, k6 = jax.random.split(key, 6)

    def u(k, shape, fan_in):
        bound = 1.0 / jnp.sqrt(fan_in)  # mimic torch.nn.Linear default init range
        return jax.random.uniform(k, shape, jnp.float32, -bound, bound)

    return {
        "w1": u(k1, (2, 64), 2),   "b1": u(k2, (1, 64), 2),
        "w2": u(k3, (64, 64), 64), "b2": u(k4, (1, 64), 64),
        "w3": u(k5, (64, 3), 64),  "b3": u(k6, (1, 3), 64),
    }


def reference_forward(x, p):
    h1 = jnp.maximum(x @ p["w1"] + p["b1"], 0.0)
    h2 = jnp.maximum(h1 @ p["w2"] + p["b2"], 0.0)
    return h2 @ p["w3"] + p["b3"]


if __name__ == "__main__":
    key = jax.random.PRNGKey(0)
    kx, kp, kx2 = jax.random.split(key, 3)
    params = init_params(kp)

    # Small-shape check (MountainCar observation is 2-dim: position, velocity).
    B = 8
    x = jax.random.normal(kx, (B, 2), jnp.float32)
    out = jax.block_until_ready(mountaincar_forward(x, params))
    ref = reference_forward(x, params)
    assert out.shape == (B, 3)
    assert jnp.allclose(out, ref, atol=1e-5, rtol=1e-5)

    # Larger, non-multiple-of-tile batch exercising the batch grid + tail padding.
    B2 = 1000
    x2 = jax.random.normal(kx2, (B2, 2), jnp.float32)
    out2 = jax.block_until_ready(mountaincar_forward(x2, params, block_b=512))
    ref2 = reference_forward(x2, params)
    assert out2.shape == (B2, 3)
    assert jnp.allclose(out2, ref2, atol=1e-5, rtol=1e-5)

    # bf16 MXU path (v6e/v7x fast path); looser tolerance.
    out_bf16 = jax.block_until_ready(mountaincar_forward(x2, params, block_b=512, use_bf16=True))
    assert jnp.allclose(out_bf16, ref2, atol=2e-2, rtol=2e-2)

    print("KERNEL_OK")
</pallas_src>

<mosaic_0001>
module attributes {stable_mosaic.version = 11 : i64} {
  func.func @_mountaincar_kernel(%arg0: i32, %arg1: memref<8x2xf32, #tpu.memory_space<vmem>>, %arg2: memref<2x64xf32, #tpu.memory_space<vmem>>, %arg3: memref<1x64xf32, #tpu.memory_space<vmem>>, %arg4: memref<64x64xf32, #tpu.memory_space<vmem>>, %arg5: memref<1x64xf32, #tpu.memory_space<vmem>>, %arg6: memref<64x128xf32, #tpu.memory_space<vmem>>, %arg7: memref<1x128xf32, #tpu.memory_space<vmem>>, %arg8: memref<8x128xf32, #tpu.memory_space<vmem>>) attributes {dimension_semantics = [#tpu.dimension_semantics<parallel>], iteration_bounds = array<i64: 1>, scalar_prefetch = 0 : i64, scratch_operands = 0 : i64, tpu.core_type = #tpu.core_type<tc>, window_params = [{transform_indices = @transform_0, window_bounds = array<i64: 8, 2>}, {pipeline_mode = #tpu.pipeline_mode<synchronous>, transform_indices = @transform_1, window_bounds = array<i64: 2, 64>}, {pipeline_mode = #tpu.pipeline_mode<synchronous>, transform_indices = @transform_2, window_bounds = array<i64: 1, 64>}, {pipeline_mode = #tpu.pipeline_mode<synchronous>, transform_indices = @transform_3, window_bounds = array<i64: 64, 64>}, {pipeline_mode = #tpu.pipeline_mode<synchronous>, transform_indices = @transform_4, window_bounds = array<i64: 1, 64>}, {pipeline_mode = #tpu.pipeline_mode<synchronous>, transform_indices = @transform_5, window_bounds = array<i64: 64, 128>}, {pipeline_mode = #tpu.pipeline_mode<synchronous>, transform_indices = @transform_6, window_bounds = array<i64: 1, 128>}, {transform_indices = @transform_7, window_bounds = array<i64: 8, 128>}]} {
    %c0 = arith.constant 0 : index
    %c0_0 = arith.constant 0 : index
    %0 = vector.load %arg1[%c0, %c0_0] : memref<8x2xf32, #tpu.memory_space<vmem>>, vector<8x2xf32>
    %1 = vector.extract_strided_slice %0 {offsets = [0, 0], sizes = [8, 1], strides = [1, 1]} : vector<8x2xf32> to vector<8x1xf32>
    %c0_1 = arith.constant 0 : index
    %c0_2 = arith.constant 0 : index
    %2 = vector.load %arg2[%c0_1, %c0_2] : memref<2x64xf32, #tpu.memory_space<vmem>>, vector<1x64xf32>
    %3 = vector.broadcast %1 : vector<8x1xf32> to vector<8x64xf32>
    %4 = vector.broadcast %2 : vector<1x64xf32> to vector<8x64xf32>
    %5 = arith.mulf %3, %4 : vector<8x64xf32>
    %6 = vector.extract_strided_slice %0 {offsets = [0, 1], sizes = [8, 1], strides = [1, 1]} : vector<8x2xf32> to vector<8x1xf32>
    %c1 = arith.constant 1 : index
    %c0_3 = arith.constant 0 : index
    %7 = vector.load %arg2[%c1, %c0_3] : memref<2x64xf32, #tpu.memory_space<vmem>>, vector<1x64xf32>
    %8 = vector.broadcast %6 : vector<8x1xf32> to vector<8x64xf32>
    %9 = vector.broadcast %7 : vector<1x64xf32> to vector<8x64xf32>
    %10 = arith.mulf %8, %9 : vector<8x64xf32>
    %11 = arith.addf %5, %10 : vector<8x64xf32>
    %c0_4 = arith.constant 0 : index
    %c0_5 = arith.constant 0 : index
    %12 = vector.load %arg3[%c0_4, %c0_5] : memref<1x64xf32, #tpu.memory_space<vmem>>, vector<1x64xf32>
    %13 = vector.broadcast %12 : vector<1x64xf32> to vector<8x64xf32>
    %14 = arith.addf %11, %13 : vector<8x64xf32>
    %cst = arith.constant 0.000000e+00 : f32
    %15 = vector.broadcast %cst : f32 to vector<8x64xf32>
    %16 = arith.maximumf %14, %15 : vector<8x64xf32>
    %c0_6 = arith.constant 0 : index
    %c0_7 = arith.constant 0 : index
    %17 = vector.load %arg4[%c0_6, %c0_7] : memref<64x64xf32, #tpu.memory_space<vmem>>, vector<64x64xf32>
    %cst_8 = arith.constant dense<0.000000e+00> : vector<8x64xf32>
    %18 = tpu.matmul %16, %17, %cst_8 {dimension_numbers = #tpu.dot_dimension_numbers<[1], [0], [0], [1], [0, 0, 1, 1], [], []>} : vector<8x64xf32>, vector<64x64xf32>, vector<8x64xf32> -> vector<8x64xf32>
    %c0_9 = arith.constant 0 : index
    %c0_10 = arith.constant 0 : index
    %19 = vector.load %arg5[%c0_9, %c0_10] : memref<1x64xf32, #tpu.memory_space<vmem>>, vector<1x64xf32>
    %20 = vector.broadcast %19 : vector<1x64xf32> to vector<8x64xf32>
    %21 = arith.addf %18, %20 : vector<8x64xf32>
    %cst_11 = arith.constant 0.000000e+00 : f32
    %22 = vector.broadcast %cst_11 : f32 to vector<8x64xf32>
    %23 = arith.maximumf %21, %22 : vector<8x64xf32>
    %c0_12 = arith.constant 0 : index
    %c0_13 = arith.constant 0 : index
    %24 = vector.load %arg6[%c0_12, %c0_13] : memref<64x128xf32, #tpu.memory_space<vmem>>, vector<64x128xf32>
    %cst_14 = arith.constant dense<0.000000e+00> : vector<8x128xf32>
    %25 = tpu.matmul %23, %24, %cst_14 {dimension_numbers = #tpu.dot_dimension_numbers<[1], [0], [0], [1], [0, 0, 1, 1], [], []>} : vector<8x64xf32>, vector<64x128xf32>, vector<8x128xf32> -> vector<8x128xf32>
    %c0_15 = arith.constant 0 : index
    %c0_16 = arith.constant 0 : index
    %26 = vector.load %arg7[%c0_15, %c0_16] : memref<1x128xf32, #tpu.memory_space<vmem>>, vector<1x128xf32>
    %27 = vector.broadcast %26 : vector<1x128xf32> to vector<8x128xf32>
    %28 = arith.addf %25, %27 : vector<8x128xf32>
    %c0_17 = arith.constant 0 : index
    %c0_18 = arith.constant 0 : index
    %29 = vector.load %arg8[%c0_17, %c0_18] : memref<8x128xf32, #tpu.memory_space<vmem>>, vector<8x128xf32>
    tpu.vector_store %arg8[%c0_17, %c0_18], %28 {strides = array<i32>} : memref<8x128xf32, #tpu.memory_space<vmem>>, vector<8x128xf32>,
    return
  }
  func.func @transform_0(%arg0: i32) -> (i32, i32) {
    %c0_i32 = arith.constant 0 : i32
    %c0_i32_0 = arith.constant 0 : i32
    return %arg0, %c0_i32 : i32, i32
  }
  func.func @transform_1(%arg0: i32) -> (i32, i32) {
    %c0_i32 = arith.constant 0 : i32
    %c0_i32_0 = arith.constant 0 : i32
    %c0_i32_1 = arith.constant 0 : i32
    return %c0_i32, %c0_i32_0 : i32, i32
  }
  func.func @transform_2(%arg0: i32) -> (i32, i32) {
    %c0_i32 = arith.constant 0 : i32
    %c0_i32_0 = arith.constant 0 : i32
    %c0_i32_1 = arith.constant 0 : i32
    return %c0_i32, %c0_i32_0 : i32, i32
  }
  func.func @transform_3(%arg0: i32) -> (i32, i32) {
    %c0_i32 = arith.constant 0 : i32
    %c0_i32_0 = arith.constant 0 : i32
    %c0_i32_1 = arith.constant 0 : i32
    return %c0_i32, %c0_i32_0 : i32, i32
  }
  func.func @transform_4(%arg0: i32) -> (i32, i32) {
    %c0_i32 = arith.constant 0 : i32
    %c0_i32_0 = arith.constant 0 : i32
    %c0_i32_1 = arith.constant 0 : i32
    return %c0_i32, %c0_i32_0 : i32, i32
  }
  func.func @transform_5(%arg0: i32) -> (i32, i32) {
    %c0_i32 = arith.constant 0 : i32
    %c0_i32_0 = arith.constant 0 : i32
    %c0_i32_1 = arith.constant 0 : i32
    return %c0_i32, %c0_i32_0 : i32, i32
  }
  func.func @transform_6(%arg0: i32) -> (i32, i32) {
    %c0_i32 = arith.constant 0 : i32
    %c0_i32_0 = arith.constant 0 : i32
    %c0_i32_1 = arith.constant 0 : i32
    return %c0_i32, %c0_i32_0 : i32, i32
  }
  func.func @transform_7(%arg0: i32) -> (i32, i32) {
    %c0_i32 = arith.constant 0 : i32
    %c0_i32_0 = arith.constant 0 : i32
    return %arg0, %c0_i32 : i32, i32
  }
}

</mosaic_0001>

<bundles_post_ra>
// kernel: mountaincar_forward.1
= control target key start
LH: loop header
LB: loop body
LE: loop exit
PB: predicated region body
PF: predicated region fallthrough
CT: control target
= control target key end

     0   :  { %v310_v0 = vmov 0   ;;  %v311_v2 = vmov 0.0   ;;  %v312_v7 = vmov 1   ;;  %vm313_vm0 = vmmov 0   ;;  %s443_s0 = inlined_call_operand.vmem [shape: f32[8,2], index: 0, kind: input, shape index: {}]   ;;  %s444_s3 = inlined_call_operand.vmem [shape: f32[64,64], index: 3, kind: input, shape index: {}]   ;;  %s445_s5 = inlined_call_operand.vmem [shape: f32[64,128], index: 5, kind: input, shape index: {}]   ;;  %s446_s1 = inlined_call_operand.vmem [shape: f32[2,64], index: 1, kind: input, shape index: {}]   ;;  %s447_s2 = inlined_call_operand.vmem [shape: f32[1,64], index: 2, kind: input, shape index: {}]   ;;  %s448_s4 = inlined_call_operand.vmem [shape: f32[1,64], index: 4, kind: input, shape index: {}]   ;;  %s449_s6 = inlined_call_operand.vmem [shape: f32[1,128], index: 6, kind: input, shape index: {}]   ;;  %s450_s7 = inlined_call_operand.vmem [shape: f32[8,128], index: 7, kind: output, shape index: {}]  }
   0x1   :  { %308 = vset.pattern.permute.xlu0 %v310_v0  ;;  %v26_v1 = vld [vmem:[%s443_s0] sm:$0xff]  ;;  %266 = vmatprep.subr.mxu0 %v311_v2  ;;  %v65_v3 = vld [vmem:[%s444_s3 + $0x38] sm:$0xff]  ;;  %v64_v4 = vld [vmem:[%s444_s3 + $0x30] sm:$0xff]  ;;  %vm73_vm1 = vcmask 523264  }
   0x2   :  { %30 = vperm.xlu0 %308, %v26_v1   ;;  %267 = vmatpush3.msra.mxu0 %v65_v3  ;;  %v63_v5 = vld [vmem:[%s444_s3 + $0x28] sm:$0xff]  ;;  %v62_v6 = vld [vmem:[%s444_s3 + $0x20] sm:$0xff]  ;;  %v61_v8 = vld [vmem:[%s444_s3 + $0x18] sm:$0xff] }
   0x3   :  { %268 = vmatprep.subr.mxu0 %v311_v2  ;;  %285 = vmatprep.subr.mxu1 %v311_v2  ;;  %v60_v9 = vld [vmem:[%s444_s3 + $0x10] sm:$0xff]  ;;  %v59_v10 = vld [vmem:[%s444_s3 + $0x8] sm:$0xff]  ;;  %v155_v11 = vld [vmem:[%s445_s5 + $0x38] sm:$0xff] }
   0x4   :  { %269 = vmatpush3.msra.mxu0 %v64_v4  ;;  %282 = vmatprep.mubr.msk.f32.mxu0 %vm313_vm0, %v311_v2  ;;  %v154_v12 = vld [vmem:[%s445_s5 + $0x30] sm:$0xff]  ;;  %v58_v13 = vld [vmem:[%s444_s3] sm:$0xff]  ;;  %v153_v14 = vld [vmem:[%s445_s5 + $0x28] sm:$0xff] }
   0x5   :  { %270 = vmatprep.subr.mxu0 %v311_v2  ;;  %301 = vmatprep.mubr.msk.f32.mxu1 %vm313_vm0, %v311_v2  ;;  %v152_v15 = vld [vmem:[%s445_s5 + $0x20] sm:$0xff]  ;;  %v151_v16 = vld [vmem:[%s445_s5 + $0x18] sm:$0xff]  ;;  %v150_v27 = vld [vmem:[%s445_s5 + $0x10] sm:$0xff] }
   0x6   :  { %309 = vset.pattern.permute.xlu0 %v312_v7  ;;  %271 = vmatpush3.msra.mxu0 %v63_v5  ;;  %v241_v18 = vld [vmem:[%s446_s1] ss:$0 sm:$0xff]  ;;  %v242_v19 = vld [vmem:[%s446_s1 + $0x1] ss:$0 sm:$0xff]  ;;  %v149_v28 = vld [vmem:[%s445_s5 + $0x8] sm:$0xff] }
   0x7   :  { %40 = vperm.xlu0 %309, %v26_v1   ;;  %272 = vmatprep.subr.mxu0 %v311_v2  ;;  %v243_v23 = vld [vmem:[%s447_s2] ss:$0 sm:$0xff] }
   0x8   :  { %273 = vmatpush3.msra.mxu0 %v62_v6  ;;  %286 = vmatpush3.msra.mxu1 %v155_v11  ;;  %v148_v29 = vld [vmem:[%s445_s5] sm:$0xff] }
   0x9   :  { %274 = vmatprep.subr.mxu0 %v311_v2  ;;  %287 = vmatprep.subr.mxu1 %v311_v2  ;;  %v244_v30 = vld [vmem:[%s448_s4] ss:$0 sm:$0xff] }
   0xa   :  { %275 = vmatpush3.msra.mxu0 %v61_v8  ;;  %288 = vmatpush3.msra.mxu1 %v154_v12  ;;  %v246_v35 = vld [vmem:[%s449_s6] ss:$0 sm:$0xff] }
   0xb   :  { %276 = vmatprep.subr.mxu0 %v311_v2  ;;  %289 = vmatprep.subr.mxu1 %v311_v2 }
   0xc   :  { %277 = vmatpush3.msra.mxu0 %v60_v9  ;;  %290 = vmatpush3.msra.mxu1 %v153_v14 }
   0xd   :  { %278 = vmatprep.subr.mxu0 %v311_v2  ;;  %291 = vmatprep.subr.mxu1 %v311_v2 }
   0xe   :  { %279 = vmatpush3.msra.mxu0 %v59_v10  ;;  %292 = vmatpush3.msra.mxu1 %v152_v15 }
   0xf   :  { %280 = vmatprep.subr.mxu0 %v311_v2  ;;  %293 = vmatprep.subr.mxu1 %v311_v2 }
  0x10   :  { %281 = vmatpush3.msra.mxu0 %v58_v13  ;;  %294 = vmatpush3.msra.mxu1 %v151_v16 }
  0x11   :  { %295 = vmatprep.subr.mxu1 %v311_v2 }
  0x12   :  { %296 = vmatpush3.msra.mxu1 %v150_v27 }
  0x13   :  { %297 = vmatprep.subr.mxu1 %v311_v2 }
  0x14   :  { %298 = vmatpush3.msra.mxu1 %v149_v28 }
  0x15   :  { %299 = vmatprep.subr.mxu1 %v311_v2 }
  0x16   :  { %300 = vmatpush3.msra.mxu1 %v148_v29 }
  0x7d   :  { %v31_v17 = vpop.permute.xlu0 %30 }
  0x7e   :  { %v37_v21 = vmul.f32 %v241_v18, %v31_v17 }
  0x82   :  { %v41_v20 = vpop.permute.xlu0 %40 }
  0x83   :  { %v47_v22 = vmul.f32 %v242_v19, %v41_v20 }
  0x85   :  { %v48_v24 = vadd.f32 %v47_v22, %v37_v21 }
  0x87   :  { %v56_v25 = vadd.f32 %v243_v23, %v48_v24 }
  0x89   :  { %v57_v26 = vmax.f32 %v56_v25, 0.0 }
  0x8b   :  { %283 = vmatmul.mubr.msk.f32.vlgmr.msra.gmra.mxu0 %vm73_vm1, %v57_v26 }
 0x14b   :  { %v143_v31 = vpop.f32.mrf.mxu0 }
 0x14c   :  { %v144_v32 = vadd.f32 %v244_v30, %v143_v31 }
 0x14d   :  { %v284_v33 = vpop.f32.mrf.mxu0 }
 0x14e   :  { %v147_v34 = vmax.f32 %v144_v32, 0.0 }
 0x150   :  { %302 = vmatmul.mubr.msk.f32.vlgmr.msra.gmra.mxu1 %vm73_vm1, %v147_v34 }
 0x210   :  { %v232_v36 = vpop.f32.mrf.mxu1 }
 0x211   :  { %v233_v37 = vadd.f32 %v246_v35, %v232_v36 }
 0x212   :  { %v303_v38 = vpop.f32.mrf.mxu1 }
 0x213   :  { %236 = vst [vmem:[%s450_s7] sm:$0xff] %v233_v37 }

</bundles_post_ra>
